<compile_context>
chip_gen: v7x
topology: tpu7x:2x2x1
jax: 0.10.0
libtpu: 0.0.40
codegen_flags: <defaults>
</compile_context>

<pallas_src>
import functools

import jax
import jax.numpy as jnp
import numpy as np
from jax.experimental import pallas as pl
from jax.experimental.pallas import tpu as pltpu

LN_EPS = 1e-5                                    # torch nn.LayerNorm default
_HIGHEST = jax.lax.Precision.HIGHEST             # wrapper-side folding only

_VMEM_BUDGET = 20 * 1024 * 1024                  # our accounting budget (headroom vs 32 MiB)
_VMEM_LIMIT = 32 * 1024 * 1024                   # explicit scoped-VMEM limit (safe on v5e/v6e/v7x)
_MIN_SPLIT_SAMPLES = 2048                        # force an even >=2-step grid above this (v7x)


def _round_up(x, m):
    return ((x + m - 1) // m) * m


def _cdiv(a, b):
    return -(-a // b)


def _lane_tile_bytes(rows, cols, itemsize):
    """VMEM footprint of a (rows, cols) tile after (8, 128) layout padding."""
    return _round_up(max(int(rows), 1), 8) * _round_up(max(int(cols), 1), 128) * int(itemsize)


def _mlp_kernel(n_hidden, x_ref, *refs):
    """refs = [W_1,b_1, ..., W_L,b_L, W_f,b_f, S, out_ref].

    Weights are pre-folded (LayerNorm affine absorbed), pre-padded/packed
    (block-diagonal over the `pack` samples sharing a 128-lane row) and bf16.
    S is the bf16 block-diagonal LayerNorm reduction matrix with 1/H folded in.
    """
    out_ref = refs[-1]
    if n_hidden:
        S = refs[-2][...]                         # resident per grid step
    h = x_ref[...].astype(jnp.float32)
    idx = 0
    for _ in range(n_hidden):
        W = refs[idx][...]                        # bf16 packed weight (LN affine folded)
        b = refs[idx + 1][...]                    # f32 packed bias
        idx += 2
        h = jnp.dot(h.astype(jnp.bfloat16), W,
                    preferred_element_type=jnp.float32) + b      # one bf16 MXU pass
        h = jnp.maximum(h, 0.0)                   # ReLU
        # Segmented LayerNorm: both reductions push against the same resident S with
        # no VPU dependency between them; var = E[h^2] - mu^2 (clamped), 1/H is in S.
        hb = h.astype(jnp.bfloat16)
        h2b = (h * h).astype(jnp.bfloat16)
        mu = jnp.dot(hb, S, preferred_element_type=jnp.float32)
        eh2 = jnp.dot(h2b, S, preferred_element_type=jnp.float32)
        var = jnp.maximum(eh2 - mu * mu, 0.0)
        h = (h - mu) * jax.lax.rsqrt(var + LN_EPS)
    W = refs[idx][...]
    b = refs[idx + 1][...]
    y = jnp.dot(h.astype(jnp.bfloat16), W, preferred_element_type=jnp.float32) + b
    out_ref[...] = jnp.maximum(y, 0.0).astype(out_ref.dtype)     # lane-dense store


def spatial_encoder_forward(coords, params, *, tile_m=4096, out_dtype=jnp.float32):
    """coords: (B, N, coord_dim) f32 -> (B, N, spa_embed_dim) of `out_dtype`.

    out_dtype=jnp.bfloat16 halves writeback/vst pressure (useful on v5e) if the
    consumer (spdec) accepts bf16; default keeps the torch-faithful f32 output.
    """
    hidden_params, (W_fin, b_fin) = params
    B, N, C = coords.shape
    M = B * N
    out_dim = W_fin.shape[1]
    H = hidden_params[0][0].shape[1] if hidden_params else C
    L = len(hidden_params)

    # ---- 1) Fold LayerNorm affine (inference-only) into the following linear ----
    #   (z*g + be) @ W + b  ==  z @ (diag(g) W) + (be @ W + b)
    def fold(W, b, g_prev, be_prev):
        W = W.astype(jnp.float32)
        b = b.reshape(1, -1).astype(jnp.float32)
        if g_prev is None:
            return W, b
        b_new = jnp.dot(be_prev.reshape(1, -1), W, precision=_HIGHEST) + b
        W_new = g_prev.reshape(-1, 1) * W
        return W_new, b_new

    layers = []
    g_prev = be_prev = None
    for (W, b, g, be) in hidden_params:
        layers.append(fold(W, b, g_prev, be_prev))
        g_prev, be_prev = g, be
    W_f, b_f = fold(W_fin, b_fin, g_prev, be_prev)

    # ---- 2) Row packing: `pack` samples share one 128-lane row; pad widths so every
    #         HBM store is 128-lane dense even when widths do not divide 128 ----
    widest = max(H, out_dim)
    if widest <= 128:
        slot = 1 << int(np.ceil(np.log2(widest)))      # power-of-two divisor of 128
        pack = 128 // slot
        if pack > 1:
            H_pad, out_pad = slot, slot
        else:
            H_pad = H                                  # intermediates need no lane padding
            out_pad = 128                              # keep the output store lane-dense
    else:
        # TODO(synk): widest > 128 and not a multiple of 128 falls back to masked stores.
        pack = 1
        H_pad, out_pad = H, out_dim

    def pad2(A, rows, cols):
        r, c = A.shape
        if c != cols:
            A = jnp.concatenate([A, jnp.zeros((r, cols - c), A.dtype)], axis=1)
        if r != rows:
            A = jnp.concatenate([A, jnp.zeros((rows - r, A.shape[1]), A.dtype)], axis=0)
        return A

    eyep = jnp.eye(pack, dtype=jnp.float32)

    def pack_w(W):      # block-diagonal over the `pack` samples sharing a row
        return jnp.kron(eyep, W) if pack > 1 else W

    def pack_b(b):
        return jnp.tile(b, (1, pack)) if pack > 1 else b

    # Packed / padded operands (bf16 weights + S for single-pass MXU; f32 biases).
    flat = []
    weight_specs = []

    def add_param(p):
        flat.append(p)
        weight_specs.append(pl.BlockSpec(p.shape, lambda i: (0, 0)))

    in_rows = C                                       # layer-0 input width (unpadded)
    for (W, b) in layers:
        Wp = pad2(W, in_rows, H_pad)
        bp = pad2(b, 1, H_pad)
        add_param(pack_w(Wp).astype(jnp.bfloat16))
        add_param(pack_b(bp).astype(jnp.float32))
        in_rows = H_pad
    Wfp = pad2(W_f, in_rows, out_pad)
    bfp = pad2(b_f, 1, out_pad)
    add_param(pack_w(Wfp).astype(jnp.bfloat16))
    add_param(pack_b(bfp).astype(jnp.float32))

    # LayerNorm reduction matrix: block-diagonal, reduces only over the real H columns,
    # with 1/H folded in (removes two VPU broadcast-multiplies per layer in the kernel).
    if L > 0:
        m = jnp.zeros((H_pad, H_pad), jnp.float32).at[:H, :H].set(1.0 / float(H))
        S = jnp.kron(eyep, m) if pack > 1 else m
    else:
        S = jnp.zeros((8, 128), jnp.float32)          # unused placeholder
    add_param(S.astype(jnp.bfloat16))

    in_w = pack * C
    hid_w = pack * H_pad if L > 0 else in_w
    out_w = pack * out_pad
    param_bytes_pad = sum(_lane_tile_bytes(p.shape[0], p.shape[1],
                                           jnp.dtype(p.dtype).itemsize) for p in flat)
    param_bytes_raw = sum(int(p.size) * jnp.dtype(p.dtype).itemsize for p in flat)

    # ---- 3) Tiling: big row tiles, VMEM-budgeted, even >=2-step grid for large M ----
    row_quantum = 8 * pack                            # 8 sublanes worth of packed rows

    def footprint(tile_samples):
        rows = tile_samples // pack
        fp = 2 * _lane_tile_bytes(rows, in_w, 4)      # input tile, double-buffered
        fp += 2 * _lane_tile_bytes(rows, out_w, jnp.dtype(out_dtype).itemsize)
        fp += 2 * param_bytes_pad                     # weights/biases/S (conservative x2)
        fp += 6 * _lane_tile_bytes(rows, max(hid_w, out_w), 4)   # working tiles
        return fp

    tile = max(row_quantum,
               (min(tile_m, _round_up(M, row_quantum)) // row_quantum) * row_quantum)
    if M >= _MIN_SPLIT_SAMPLES:
        # v7x has 2 TensorCores: keep the row grid even and >= 2 so both get work.
        steps = max(2, _cdiv(M, tile))
        if steps % 2:
            steps += 1
        tile = max(row_quantum, _round_up(_cdiv(M, steps), row_quantum))
    while tile > row_quantum and footprint(tile) > _VMEM_BUDGET:
        tile = max(row_quantum, ((tile // 2) // row_quantum) * row_quantum)

    Mp = _round_up(M, tile)
    grid_m = Mp // tile
    rows_per_tile = tile // pack                      # packed rows per step (mult of 8)

    x = coords.reshape(M, C).astype(jnp.float32)
    if Mp != M:
        x = jnp.concatenate([x, jnp.zeros((Mp - M, C), jnp.float32)], axis=0)
    x_packed = x.reshape(Mp // pack, pack * C)

    in_specs = [pl.BlockSpec((rows_per_tile, pack * C), lambda i: (i, 0))] + weight_specs
    out_spec = pl.BlockSpec((rows_per_tile, out_w), lambda i: (i, 0))
    out_packed_shape = (Mp // pack, out_w)

    # ---- 4) Advisory cost (actual padded/packed single-pass MXU work) ----
    rows_p = Mp // pack
    if L > 0:
        mxu_flops = 2 * rows_p * (in_w * hid_w            # layer 0
                                  + (L - 1) * hid_w * hid_w   # hidden layers
                                  + 2 * L * hid_w * hid_w     # two S reductions / layer
                                  + hid_w * out_w)            # final layer
    else:
        mxu_flops = 2 * rows_p * in_w * out_w
    cost = pl.CostEstimate(
        flops=int(mxu_flops),
        transcendentals=int(rows_p * hid_w * L),          # rsqrt evaluated per lane
        bytes_accessed=int(4 * rows_p * in_w
                           + jnp.dtype(out_dtype).itemsize * rows_p * out_w
                           + grid_m * param_bytes_raw),
    )

    kernel = functools.partial(_mlp_kernel, L)
    out = pl.pallas_call(
        kernel,
        out_shape=jax.ShapeDtypeStruct(out_packed_shape, out_dtype),
        grid_spec=pltpu.PrefetchScalarGridSpec(
            num_scalar_prefetch=0,
            grid=(grid_m,),
            in_specs=in_specs,
            out_specs=out_spec,
        ),
        compiler_params=pltpu.CompilerParams(
            dimension_semantics=("parallel",),
            vmem_limit_bytes=_VMEM_LIMIT),
        cost_estimate=cost,
    )(x_packed, *flat)

    # Un-pack: (Mp/pack, pack*out_pad) -> (Mp, out_pad) is a free row-major reshape;
    # the column slice drops zero-padded output features (no-op when out_dim == out_pad).
    y = out.reshape(Mp, out_pad)[:M, :out_dim]
    return y.reshape(B, N, out_dim)


def init_params(key, coord_dim, spa_embed_dim, nn_length, nn_hidden_dim):
    """Deterministic init matching the torch module's parameter shapes.
    Linear weights: xavier_uniform; biases: U(-1/sqrt(fan_in), 1/sqrt(fan_in));
    LayerNorm: gamma=1, beta=0. Weights stored as (in, out) for x @ W."""

    def xavier(k, fan_in, fan_out):
        bound = float(np.sqrt(6.0 / (fan_in + fan_out)))
        return jax.random.uniform(k, (fan_in, fan_out), jnp.float32, -bound, bound)

    keys = jax.random.split(key, 2 * (nn_length + 1))
    ki = 0
    hidden = []
    in_dim = coord_dim
    for _ in range(nn_length):
        W = xavier(keys[ki], in_dim, nn_hidden_dim); ki += 1
        bb = 1.0 / float(np.sqrt(in_dim))
        b = jax.random.uniform(keys[ki], (1, nn_hidden_dim), jnp.float32, -bb, bb); ki += 1
        g = jnp.ones((1, nn_hidden_dim), jnp.float32)
        be = jnp.zeros((1, nn_hidden_dim), jnp.float32)
        hidden.append((W, b, g, be))
        in_dim = nn_hidden_dim
    Wf = xavier(keys[ki], in_dim, spa_embed_dim); ki += 1
    bb = 1.0 / float(np.sqrt(in_dim))
    bf = jax.random.uniform(keys[ki], (1, spa_embed_dim), jnp.float32, -bb, bb)
    return tuple(hidden), (Wf, bf)


def spatial_encoder_reference(coords, params):
    """Pure-JAX reference (torch-faithful; full-precision matmuls)."""
    hidden_params, (Wf, bf) = params
    h = coords.astype(jnp.float32)
    for (W, b, g, be) in hidden_params:
        h = jnp.maximum(jnp.dot(h, W, precision=_HIGHEST) + b, 0.0)
        mu = jnp.mean(h, axis=-1, keepdims=True)
        var = jnp.mean((h - mu) ** 2, axis=-1, keepdims=True)
        h = (h - mu) * jax.lax.rsqrt(var + LN_EPS) * g + be
    return jnp.maximum(jnp.dot(h, Wf, precision=_HIGHEST) + bf, 0.0)


if __name__ == "__main__":
    # PEGCN builds SpatialEncoder(spa_embed_dim=emb_hidden_dim, ffn=True, settings)
    # with settings like {'nn_length': 2, 'nn_hidden_dim': 32, 'dropout_rate': 0.5}.
    batch, num_context_pt, coord_dim = 2, 40, 2        # M = 80: exercises row padding
    spa_embed_dim, nn_length, nn_hidden_dim = 32, 2, 32

    key = jax.random.PRNGKey(0)
    k_coords, k_params = jax.random.split(key)
    coords = jax.random.normal(k_coords, (batch, num_context_pt, coord_dim), jnp.float32)
    params = init_params(k_params, coord_dim, spa_embed_dim, nn_length, nn_hidden_dim)

    ref = spatial_encoder_reference(coords, params)

    # Default (large) row tile, clamped to the padded problem -> single grid step.
    out = jax.block_until_ready(spatial_encoder_forward(coords, params))
    # bf16 MXU passes (f32 accumulation) => relaxed tolerance vs the f32 reference.
    np.testing.assert_allclose(np.asarray(out), np.asarray(ref), rtol=2e-2, atol=2e-2)
    assert out.shape == (batch, num_context_pt, spa_embed_dim)

    # Small row tile -> multi-step grid + zero-padded tail; same numerics.
    out2 = jax.block_until_ready(spatial_encoder_forward(coords, params, tile_m=32))
    np.testing.assert_allclose(np.asarray(out2), np.asarray(ref), rtol=2e-2, atol=2e-2)

    print("KERNEL_OK")
</pallas_src>

<mosaic_0001>
module attributes {stable_mosaic.version = 11 : i64} {
  func.func @_mlp_kernel(%arg0: i32, %arg1: memref<24x8xf32, #tpu.memory_space<vmem>>, %arg2: memref<8x128xbf16, #tpu.memory_space<vmem>>, %arg3: memref<1x128xf32, #tpu.memory_space<vmem>>, %arg4: memref<128x128xbf16, #tpu.memory_space<vmem>>, %arg5: memref<1x128xf32, #tpu.memory_space<vmem>>, %arg6: memref<128x128xbf16, #tpu.memory_space<vmem>>, %arg7: memref<1x128xf32, #tpu.memory_space<vmem>>, %arg8: memref<128x128xbf16, #tpu.memory_space<vmem>>, %arg9: memref<24x128xf32, #tpu.memory_space<vmem>>) attributes {dimension_semantics = [#tpu.dimension_semantics<parallel>], iteration_bounds = array<i64: 1>, scalar_prefetch = 0 : i64, scratch_operands = 0 : i64, tpu.core_type = #tpu.core_type<tc>, window_params = [{transform_indices = @transform_0, window_bounds = array<i64: 24, 8>}, {pipeline_mode = #tpu.pipeline_mode<synchronous>, transform_indices = @transform_1, window_bounds = array<i64: 8, 128>}, {pipeline_mode = #tpu.pipeline_mode<synchronous>, transform_indices = @transform_2, window_bounds = array<i64: 1, 128>}, {pipeline_mode = #tpu.pipeline_mode<synchronous>, transform_indices = @transform_3, window_bounds = array<i64: 128, 128>}, {pipeline_mode = #tpu.pipeline_mode<synchronous>, transform_indices = @transform_4, window_bounds = array<i64: 1, 128>}, {pipeline_mode = #tpu.pipeline_mode<synchronous>, transform_indices = @transform_5, window_bounds = array<i64: 128, 128>}, {pipeline_mode = #tpu.pipeline_mode<synchronous>, transform_indices = @transform_6, window_bounds = array<i64: 1, 128>}, {pipeline_mode = #tpu.pipeline_mode<synchronous>, transform_indices = @transform_7, window_bounds = array<i64: 128, 128>}, {transform_indices = @transform_8, window_bounds = array<i64: 24, 128>}]} {
    %c0 = arith.constant 0 : index
    %c0_0 = arith.constant 0 : index
    %0 = vector.load %arg8[%c0, %c0_0] : memref<128x128xbf16, #tpu.memory_space<vmem>>, vector<128x128xbf16>
    %c0_1 = arith.constant 0 : index
    %c0_2 = arith.constant 0 : index
    %1 = vector.load %arg1[%c0_1, %c0_2] : memref<24x8xf32, #tpu.memory_space<vmem>>, vector<24x8xf32>
    %c0_3 = arith.constant 0 : index
    %c0_4 = arith.constant 0 : index
    %2 = vector.load %arg2[%c0_3, %c0_4] : memref<8x128xbf16, #tpu.memory_space<vmem>>, vector<8x128xbf16>
    %c0_5 = arith.constant 0 : index
    %c0_6 = arith.constant 0 : index
    %3 = vector.load %arg3[%c0_5, %c0_6] : memref<1x128xf32, #tpu.memory_space<vmem>>, vector<1x128xf32>
    %4 = arith.truncf %1 : vector<24x8xf32> to vector<24x8xbf16>
    %cst = arith.constant dense<0.000000e+00> : vector<24x128xf32>
    %5 = tpu.matmul %4, %2, %cst {dimension_numbers = #tpu.dot_dimension_numbers<[1], [0], [0], [1], [0, 0, 1, 1], [], []>} : vector<24x8xbf16>, vector<8x128xbf16>, vector<24x128xf32> -> vector<24x128xf32>
    %6 = vector.broadcast %3 : vector<1x128xf32> to vector<24x128xf32>
    %7 = arith.addf %5, %6 : vector<24x128xf32>
    %cst_7 = arith.constant 0.000000e+00 : f32
    %8 = vector.broadcast %cst_7 : f32 to vector<24x128xf32>
    %9 = arith.maximumf %7, %8 : vector<24x128xf32>
    %10 = arith.truncf %9 : vector<24x128xf32> to vector<24x128xbf16>
    %11 = arith.mulf %9, %9 : vector<24x128xf32>
    %12 = arith.truncf %11 : vector<24x128xf32> to vector<24x128xbf16>
    %cst_8 = arith.constant dense<0.000000e+00> : vector<24x128xf32>
    %13 = tpu.matmul %10, %0, %cst_8 {dimension_numbers = #tpu.dot_dimension_numbers<[1], [0], [0], [1], [0, 0, 1, 1], [], []>} : vector<24x128xbf16>, vector<128x128xbf16>, vector<24x128xf32> -> vector<24x128xf32>
    %cst_9 = arith.constant dense<0.000000e+00> : vector<24x128xf32>
    %14 = tpu.matmul %12, %0, %cst_9 {dimension_numbers = #tpu.dot_dimension_numbers<[1], [0], [0], [1], [0, 0, 1, 1], [], []>} : vector<24x128xbf16>, vector<128x128xbf16>, vector<24x128xf32> -> vector<24x128xf32>
    %15 = arith.mulf %13, %13 : vector<24x128xf32>
    %16 = arith.subf %14, %15 : vector<24x128xf32>
    %cst_10 = arith.constant 0.000000e+00 : f32
    %17 = vector.broadcast %cst_10 : f32 to vector<24x128xf32>
    %18 = arith.maximumf %16, %17 : vector<24x128xf32>
    %19 = arith.subf %9, %13 : vector<24x128xf32>
    %cst_11 = arith.constant 9.99999974E-6 : f32
    %20 = vector.broadcast %cst_11 : f32 to vector<24x128xf32>
    %21 = arith.addf %18, %20 : vector<24x128xf32>
    %22 = math.rsqrt %21 : vector<24x128xf32>
    %23 = arith.mulf %19, %22 : vector<24x128xf32>
    %c0_12 = arith.constant 0 : index
    %c0_13 = arith.constant 0 : index
    %24 = vector.load %arg4[%c0_12, %c0_13] : memref<128x128xbf16, #tpu.memory_space<vmem>>, vector<128x128xbf16>
    %c0_14 = arith.constant 0 : index
    %c0_15 = arith.constant 0 : index
    %25 = vector.load %arg5[%c0_14, %c0_15] : memref<1x128xf32, #tpu.memory_space<vmem>>, vector<1x128xf32>
    %26 = arith.truncf %23 : vector<24x128xf32> to vector<24x128xbf16>
    %cst_16 = arith.constant dense<0.000000e+00> : vector<24x128xf32>
    %27 = tpu.matmul %26, %24, %cst_16 {dimension_numbers = #tpu.dot_dimension_numbers<[1], [0], [0], [1], [0, 0, 1, 1], [], []>} : vector<24x128xbf16>, vector<128x128xbf16>, vector<24x128xf32> -> vector<24x128xf32>
    %28 = vector.broadcast %25 : vector<1x128xf32> to vector<24x128xf32>
    %29 = arith.addf %27, %28 : vector<24x128xf32>
    %cst_17 = arith.constant 0.000000e+00 : f32
    %30 = vector.broadcast %cst_17 : f32 to vector<24x128xf32>
    %31 = arith.maximumf %29, %30 : vector<24x128xf32>
    %32 = arith.truncf %31 : vector<24x128xf32> to vector<24x128xbf16>
    %33 = arith.mulf %31, %31 : vector<24x128xf32>
    %34 = arith.truncf %33 : vector<24x128xf32> to vector<24x128xbf16>
    %cst_18 = arith.constant dense<0.000000e+00> : vector<24x128xf32>
    %35 = tpu.matmul %32, %0, %cst_18 {dimension_numbers = #tpu.dot_dimension_numbers<[1], [0], [0], [1], [0, 0, 1, 1], [], []>} : vector<24x128xbf16>, vector<128x128xbf16>, vector<24x128xf32> -> vector<24x128xf32>
    %cst_19 = arith.constant dense<0.000000e+00> : vector<24x128xf32>
    %36 = tpu.matmul %34, %0, %cst_19 {dimension_numbers = #tpu.dot_dimension_numbers<[1], [0], [0], [1], [0, 0, 1, 1], [], []>} : vector<24x128xbf16>, vector<128x128xbf16>, vector<24x128xf32> -> vector<24x128xf32>
    %37 = arith.mulf %35, %35 : vector<24x128xf32>
    %38 = arith.subf %36, %37 : vector<24x128xf32>
    %cst_20 = arith.constant 0.000000e+00 : f32
    %39 = vector.broadcast %cst_20 : f32 to vector<24x128xf32>
    %40 = arith.maximumf %38, %39 : vector<24x128xf32>
    %41 = arith.subf %31, %35 : vector<24x128xf32>
    %cst_21 = arith.constant 9.99999974E-6 : f32
    %42 = vector.broadcast %cst_21 : f32 to vector<24x128xf32>
    %43 = arith.addf %40, %42 : vector<24x128xf32>
    %44 = math.rsqrt %43 : vector<24x128xf32>
    %45 = arith.mulf %41, %44 : vector<24x128xf32>
    %c0_22 = arith.constant 0 : index
    %c0_23 = arith.constant 0 : index
    %46 = vector.load %arg6[%c0_22, %c0_23] : memref<128x128xbf16, #tpu.memory_space<vmem>>, vector<128x128xbf16>
    %c0_24 = arith.constant 0 : index
    %c0_25 = arith.constant 0 : index
    %47 = vector.load %arg7[%c0_24, %c0_25] : memref<1x128xf32, #tpu.memory_space<vmem>>, vector<1x128xf32>
    %48 = arith.truncf %45 : vector<24x128xf32> to vector<24x128xbf16>
    %cst_26 = arith.constant dense<0.000000e+00> : vector<24x128xf32>
    %49 = tpu.matmul %48, %46, %cst_26 {dimension_numbers = #tpu.dot_dimension_numbers<[1], [0], [0], [1], [0, 0, 1, 1], [], []>} : vector<24x128xbf16>, vector<128x128xbf16>, vector<24x128xf32> -> vector<24x128xf32>
    %50 = vector.broadcast %47 : vector<1x128xf32> to vector<24x128xf32>
    %51 = arith.addf %49, %50 : vector<24x128xf32>
    %cst_27 = arith.constant 0.000000e+00 : f32
    %52 = vector.broadcast %cst_27 : f32 to vector<24x128xf32>
    %53 = arith.maximumf %51, %52 : vector<24x128xf32>
    %c0_28 = arith.constant 0 : index
    %c0_29 = arith.constant 0 : index
    %54 = vector.load %arg9[%c0_28, %c0_29] : memref<24x128xf32, #tpu.memory_space<vmem>>, vector<24x128xf32>
    tpu.vector_store %arg9[%c0_28, %c0_29], %53 {strides = array<i32>} : memref<24x128xf32, #tpu.memory_space<vmem>>, vector<24x128xf32>,
    return
  }
  func.func @transform_0(%arg0: i32) -> (i32, i32) {
    %c0_i32 = arith.constant 0 : i32
    %c0_i32_0 = arith.constant 0 : i32
    return %arg0, %c0_i32 : i32, i32
  }
  func.func @transform_1(%arg0: i32) -> (i32, i32) {
    %c0_i32 = arith.constant 0 : i32
    %c0_i32_0 = arith.constant 0 : i32
    %c0_i32_1 = arith.constant 0 : i32
    return %c0_i32, %c0_i32_0 : i32, i32
  }
  func.func @transform_2(%arg0: i32) -> (i32, i32) {
    %c0_i32 = arith.constant 0 : i32
    %c0_i32_0 = arith.constant 0 : i32
    %c0_i32_1 = arith.constant 0 : i32
    return %c0_i32, %c0_i32_0 : i32, i32
  }
  func.func @transform_3(%arg0: i32) -> (i32, i32) {
    %c0_i32 = arith.constant 0 : i32
    %c0_i32_0 = arith.constant 0 : i32
    %c0_i32_1 = arith.constant 0 : i32
    return %c0_i32, %c0_i32_0 : i32, i32
  }
  func.func @transform_4(%arg0: i32) -> (i32, i32) {
    %c0_i32 = arith.constant 0 : i32
    %c0_i32_0 = arith.constant 0 : i32
    %c0_i32_1 = arith.constant 0 : i32
    return %c0_i32, %c0_i32_0 : i32, i32
  }
  func.func @transform_5(%arg0: i32) -> (i32, i32) {
    %c0_i32 = arith.constant 0 : i32
    %c0_i32_0 = arith.constant 0 : i32
    %c0_i32_1 = arith.constant 0 : i32
    return %c0_i32, %c0_i32_0 : i32, i32
  }
  func.func @transform_6(%arg0: i32) -> (i32, i32) {
    %c0_i32 = arith.constant 0 : i32
    %c0_i32_0 = arith.constant 0 : i32
    %c0_i32_1 = arith.constant 0 : i32
    return %c0_i32, %c0_i32_0 : i32, i32
  }
  func.func @transform_7(%arg0: i32) -> (i32, i32) {
    %c0_i32 = arith.constant 0 : i32
    %c0_i32_0 = arith.constant 0 : i32
    %c0_i32_1 = arith.constant 0 : i32
    return %c0_i32, %c0_i32_0 : i32, i32
  }
  func.func @transform_8(%arg0: i32) -> (i32, i32) {
    %c0_i32 = arith.constant 0 : i32
    %c0_i32_0 = arith.constant 0 : i32
    return %arg0, %c0_i32 : i32, i32
  }
}

</mosaic_0001>

<bundles_post_ra>
// kernel: tpu_custom_call.1
= control target key start
LH: loop header
LB: loop body
LE: loop exit
PB: predicated region body
PF: predicated region fallthrough
CT: control target
= control target key end

     0   :  { %13 = vsyncpa [#allocation3], 0  ;;  %s1341_s0 = inlined_call_operand.vmem [shape: f32[24,8], index: 0, kind: input, shape index: {}]   ;;  %s1342_s1 = inlined_call_operand.vmem [shape: bf16[8,128], index: 1, kind: input, shape index: {}]   ;;  %s1343_s2 = inlined_call_operand.vmem [shape: f32[1,128], index: 2, kind: input, shape index: {}]   ;;  %s1344_s3 = inlined_call_operand.hbm [shape: bf16[128,128], index: 3, kind: input, shape index: {}]   ;;  %s1345_s4 = inlined_call_operand.vmem [shape: f32[1,128], index: 4, kind: input, shape index: {}]   ;;  %s1346_s5 = inlined_call_operand.hbm [shape: bf16[128,128], index: 5, kind: input, shape index: {}]   ;;  %s1347_s6 = inlined_call_operand.vmem [shape: f32[1,128], index: 6, kind: input, shape index: {}]   ;;  %s1348_s7 = inlined_call_operand.hbm [shape: bf16[128,128], index: 7, kind: input, shape index: {}]   ;;  %s1349_s8 = inlined_call_operand.hbm [shape: f32[24,128], index: 8, kind: output, shape index: {}]  }
   0x1   :  { %14 = vsyncpa [#allocation6], 0 }
   0x2   :  { %15 = vsyncpa [#allocation4], 0  ;;  %s1085_s27 = smov [#allocation5]   ;;  %s1086_s29 = smov [#allocation2]  }
   0x3   :  { %s41_s28 = sshll.u32 %s1085_s27, 4  ;;  %s27_s30 = sshll.u32 %s1086_s29, 4  ;;  %s42_s28 = int_to_ptr.vmem [resolvable:$true] %s41_s28  ;;  %s1138_s30 = int_to_ptr.vmem [resolvable:$true] %s27_s30 }
   0x4   :  { %s991_s11 = scalar_lea.hbm %s1346_s5, 1024 }
   0x5   :  { %p992_p0 = scmp.ne.s32.totalorder %s1346_s5, %s991_s11  ;;  %p995_p1 = scmp.lt.u32.totalorder %s991_s11, %s1346_s5 }
   0x7   :  { %p997_p2 = pnand %p995_p1, %p992_p0 }
   0x9   :  { %1000 = shalt.err (!%p997_p2)
}
   0xa   :  { %s1001_s16 = scalar_lea.vmem %s42_s28, 1024  ;;  %p1006_p4 = scmp.lt.s32.totalorder %s42_s28, %s42_s28 }
   0xb   :  { %p1002_p3 = scmp.ne.s32.totalorder %s42_s28, %s1001_s16  ;;  %p1007_p5 = scmp.lt.s32.totalorder %s1001_s16, %s1001_s16 }
   0xd   :  { %p1008_p6 = por %p1007_p5, %p1006_p4 }
   0xf   :  { %p1009_p7 = pnand %p1008_p6, %p1002_p3 }
  0x11   :  { %1012 = shalt.err (!%p1009_p7)
}
  0x12   :  { %s1087_s17 = smov 64   ;;  %s1088_s18 = smov 4  }
  0x13   :  { %47 = dma.hbm_to_vmem [thread:$0]  %s1346_s5, 1024, %s42_s28, [#allocation6], %s1087_s17, %s1087_s17, %s1088_s18  }
  0x14   :  { %s1013_s23 = scalar_lea.hbm %s1344_s3, 1024 }
  0x15   :  { %p1014_p8 = scmp.ne.s32.totalorder %s1344_s3, %s1013_s23  ;;  %p1017_p9 = scmp.lt.u32.totalorder %s1013_s23, %s1344_s3 }
  0x17   :  { %p1019_p10 = pnand %p1017_p9, %p1014_p8 }
  0x19   :  { %1022 = shalt.err (!%p1019_p10)
}
  0x1a   :  { %s1023_s29 = scalar_lea.vmem %s1138_s30, 1024  ;;  %p1028_p12 = scmp.lt.s32.totalorder %s1138_s30, %s1138_s30 }
  0x1b   :  { %p1024_p11 = scmp.ne.s32.totalorder %s1138_s30, %s1023_s29  ;;  %p1029_p13 = scmp.lt.s32.totalorder %s1023_s29, %s1023_s29 }
  0x1d   :  { %p1030_p0 = por %p1029_p13, %p1028_p12 }
  0x1f   :  { %p1031_p1 = pnand %p1030_p0, %p1024_p11 }
  0x21   :  { %1034 = shalt.err (!%p1031_p1)
}
  0x22   :  { %33 = dma.hbm_to_vmem [thread:$0]  %s1344_s3, 1024, %s1138_s30, [#allocation3], %s1087_s17, %s1087_s17, %s1088_s18  }
  0x23   :  { %s1089_s9 = smov [#allocation7]   ;;  %s1035_s13 = scalar_lea.hbm %s1348_s7, 1024 }
  0x24   :  { %s55_s10 = sshll.u32 %s1089_s9, 4  ;;  %p1036_p2 = scmp.ne.s32.totalorder %s1348_s7, %s1035_s13  ;;  %s56_s10 = int_to_ptr.vmem [resolvable:$true] %s55_s10 }
  0x25   :  { %p1039_p3 = scmp.lt.u32.totalorder %s1035_s13, %s1348_s7 }
  0x27   :  { %p1041_p4 = pnand %p1039_p3, %p1036_p2 }
  0x29   :  { %1044 = shalt.err (!%p1041_p4)
}
  0x2a   :  { %s1045_s20 = scalar_lea.vmem %s56_s10, 1024  ;;  %p1050_p6 = scmp.lt.s32.totalorder %s56_s10, %s56_s10 }
  0x2b   :  { %p1046_p5 = scmp.ne.s32.totalorder %s56_s10, %s1045_s20  ;;  %p1051_p7 = scmp.lt.s32.totalorder %s1045_s20, %s1045_s20 }
  0x2d   :  { %p1052_p8 = por %p1051_p7, %p1050_p6 }
  0x2f   :  { %p1053_p9 = pnand %p1052_p8, %p1046_p5 }
  0x31   :  { %1056 = shalt.err (!%p1053_p9)
}
  0x32   :  { %61 = dma.hbm_to_vmem [thread:$0]  %s1348_s7, 1024, %s56_s10, [#allocation6], %s1087_s17, %s1087_s17, %s1088_s18  }
  0x33   :  { %1079 = dma.done.wait [#allocation3], 1024  }
  0x34   :  { %1080 = vsyncadd [#allocation3], 4294966272 }
  0x35   :  { %1081 = dma.done.wait [#allocation6], 2048  }
  0x36   :  { %1082 = vsyncadd [#allocation6], 4294965248  ;;  %vm108_vm0 = vcmask 1043456   ;;  %v91_v0 = vld [vmem:[%s1342_s1] sm:$0xf]  ;;  %v89_v2 = vld [vmem:[%s1341_s0 + $0x8] sm:$0xff] }
  0x37   :  { %v88_v1 = vld [vmem:[%s1341_s0] sm:$0xff]  ;;  %vm101_vm1 = vcmask 64512   ;;  %946 = vmatprep.subr.msk.bf16.mxu0 %vm108_vm0, %v91_v0  ;;  %v110_v3 = vsel %vm108_vm0, %v91_v0, 0  ;;  %v90_v5 = vld [vmem:[%s1341_s0 + $0x10] sm:$0xff]  ;;  %v1204_v8 = vld [vmem:[#allocation7 + $0x8] sm:$0xff]   ;;  %s1090_s29 = smov [#allocation8]  }
  0x38   :  { %v93_v4 = vpack.c.bf16 %v89_v2, %v88_v1  ;;  %821 = vmatpush3.bf16.msra.mxu0 %v110_v3  ;;  %v94_v6 = vpack.c.bf16 %v90_v5, %v90_v5  ;;  %v1202_v7 = vld [vmem:[#allocation7] sm:$0xff]   ;;  %v1211_v9 = vld [vmem:[#allocation7 + $0x10] sm:$0xff]   ;;  %v1214_v10 = vld [vmem:[#allocation7 + $0x18] sm:$0xff]   ;;  %s715_s5 = sshll.u32 %s1090_s29, 4  ;;  %s716_s5 = int_to_ptr.vmem [resolvable:$true] %s715_s5 }
  0x39   :  { %826 = vmatprep.subr.bf16.mxu1 %v1202_v7  ;;  %846 = vmatprep.subr.bf16.mxu0 %v1202_v7  ;;  %v1220_v11 = vld [vmem:[#allocation7 + $0x20] sm:$0xff]   ;;  %v1226_v12 = vld [vmem:[#allocation7 + $0x28] sm:$0xff]   ;;  %v1238_v13 = vld [vmem:[#allocation7 + $0x30] sm:$0xff]   ;;  %s1057_s28 = scalar_lea.vmem %s716_s5, 384  ;;  %p1062_p11 = scmp.lt.s32.totalorder %s716_s5, %s716_s5 }
  0x3a   :  { %822 = vmatprep.mubr.msk.bf16.mxu0 %vm101_vm1, %v93_v4  ;;  %827 = vmatpush3.bf16.msra.mxu1 %v1202_v7  ;;  %v1244_v14 = vld [vmem:[#allocation7 + $0x38] sm:$0xff]   ;;  %v963_v15 = vld [vmem:[#allocation2] sm:$0xff]   ;;  %v964_v34 = vld [vmem:[#allocation2 + $0x8] sm:$0xff]   ;;  %p1058_p10 = scmp.ne.s32.totalorder %s716_s5, %s1057_s28  ;;  %p1063_p12 = scmp.lt.s32.totalorder %s1057_s28, %s1057_s28 }
  0x3b   :  { %823 = vmatmul.mubr.msk.bf16.vlgmr.msra.gmra.mrb[0].mxu0 %vm101_vm1, %v94_v6  ;;  %828 = vmatprep.subr.bf16.mxu1 %v1204_v8  ;;  %v728_v16 = vld [vmem:[%s1343_s2] ss:$0 sm:$0xff]  ;;  %v965_v35 = vld [vmem:[#allocation2 + $0x10] sm:$0xff]   ;;  %v966_v36 = vld [vmem:[#allocation2 + $0x18] sm:$0xff]  }
  0x3c   :  { %847 = vmatpush3.bf16.msra.mxu0 %v1202_v7  ;;  %v967_v37 = vld [vmem:[#allocation2 + $0x20] sm:$0xff]   ;;  %v968_v38 = vld [vmem:[#allocation2 + $0x28] sm:$0xff]   ;;  %v969_v39 = vld [vmem:[#allocation2 + $0x30] sm:$0xff]   ;;  %p1064_p13 = por %p1063_p12, %p1062_p11 }
  0x3d   :  { %848 = vmatprep.subr.bf16.mxu0 %v1204_v8  ;;  %v970_v40 = vld [vmem:[#allocation2 + $0x38] sm:$0xff]  }
  0x3e   :  { %829 = vmatpush3.bf16.msra.mxu1 %v1204_v8  ;;  %p1065_p0 = pnand %p1064_p13, %p1058_p10 }
  0x3f   :  { %830 = vmatprep.subr.bf16.mxu1 %v1211_v9 }
  0x40   :  { %849 = vmatpush3.bf16.msra.mxu0 %v1204_v8 }
  0x41   :  { %850 = vmatprep.subr.bf16.mxu0 %v1211_v9 }
  0x42   :  { %831 = vmatpush3.bf16.msra.mxu1 %v1211_v9 }
  0x43   :  { %832 = vmatprep.subr.bf16.mxu1 %v1214_v10 }
  0x44   :  { %851 = vmatpush3.bf16.msra.mxu0 %v1211_v9 }
  0x45   :  { %852 = vmatprep.subr.bf16.mxu0 %v1214_v10 }
  0x46   :  { %833 = vmatpush3.bf16.msra.mxu1 %v1214_v10 }
  0x47   :  { %834 = vmatprep.subr.bf16.mxu1 %v1220_v11 }
  0x48   :  { %853 = vmatpush3.bf16.msra.mxu0 %v1214_v10 }
  0x49   :  { %854 = vmatprep.subr.bf16.mxu0 %v1220_v11 }
  0x4a   :  { %835 = vmatpush3.bf16.msra.mxu1 %v1220_v11 }
  0x4b   :  { %836 = vmatprep.subr.bf16.mxu1 %v1226_v12 }
  0x4c   :  { %855 = vmatpush3.bf16.msra.mxu0 %v1220_v11 }
  0x4d   :  { %856 = vmatprep.subr.bf16.mxu0 %v1226_v12 }
  0x4e   :  { %837 = vmatpush3.bf16.msra.mxu1 %v1226_v12 }
  0x4f   :  { %838 = vmatprep.subr.bf16.mxu1 %v1238_v13 }
  0x50   :  { %857 = vmatpush3.bf16.msra.mxu0 %v1226_v12 }
  0x51   :  { %858 = vmatprep.subr.bf16.mxu0 %v1238_v13 }
  0x52   :  { %839 = vmatpush3.bf16.msra.mxu1 %v1238_v13 }
  0x53   :  { %840 = vmatprep.subr.bf16.mxu1 %v1244_v14 }
  0x54   :  { %859 = vmatpush3.bf16.msra.mxu0 %v1238_v13 }
  0x55   :  { %860 = vmatprep.subr.bf16.mxu0 %v1244_v14 }
  0x56   :  { %841 = vmatpush3.bf16.msra.mxu1 %v1244_v14 }
  0x57   :  { %866 = vmatprep.subr.bf16.mxu1 %v963_v15 }
  0x58   :  { %861 = vmatpush3.bf16.msra.mxu0 %v1244_v14 }
  0x59   :  { %886 = vmatprep.subr.bf16.mxu0 %v1202_v7 }
 0x10e   :  { %v824_v17 = vpop.f32.mrb[0].mxu0 }
 0x10f   :  { %v155_v18 = vadd.f32 %v824_v17, %v728_v16  ;;  %v146_v19 = vpop.f32.mrb[1].mxu0 }
 0x110   :  { %v147_v20 = vadd.f32 %v728_v16, %v146_v19  ;;  %v825_v21 = vpop.f32.mrb[2].mxu0 }
 0x111   :  { %v1254_v22 = vmax.f32 %v155_v18, 0.0  ;;  %v149_v23 = vpop.f32.mrb[3].mxu0 }
 0x112   :  { %v1256_v24 = vmax.f32 %v147_v20, 0.0  ;;  %v150_v25 = vadd.f32 %v728_v16, %v149_v23 }
 0x113   :  { %v167_v27 = vmul.f32 %v1254_v22, %v1254_v22  ;;  %v164_v31 = vpack.c.bf16 %v1254_v22, %v1254_v22 }
 0x114   :  { %v1258_v26 = vmax.f32 %v150_v25, 0.0  ;;  %v165_v28 = vmul.f32 %v1256_v24, %v1256_v24 }
 0x115   :  { %v169_v33 = vpack.c.bf16 %v167_v27, %v167_v27  ;;  %v972_v27 = vld [vmem:[#allocation5 + $0x8] sm:$0xff]  }
 0x116   :  { %v166_v29 = vmul.f32 %v1258_v26, %v1258_v26  ;;  %v163_v30 = vpack.c.bf16 %v1258_v26, %v1256_v24 }
 0x118   :  { %842 = vmatprep.mubr.bf16.mxu1 %v163_v30  ;;  %v168_v32 = vpack.c.bf16 %v166_v29, %v165_v28  ;;  %v973_v28 = vld [vmem:[#allocation5 + $0x10] sm:$0xff]   ;;  %v974_v29 = vld [vmem:[#allocation5 + $0x18] sm:$0xff]   ;;  %v975_v30 = vld [vmem:[#allocation5 + $0x20] sm:$0xff]  }
 0x119   :  { %843 = vmatmul.mubr.bf16.vlgmr.msra.gmra.mrb[0].mxu1 %v164_v31  ;;  %v976_v31 = vld [vmem:[#allocation5 + $0x28] sm:$0xff]  }
 0x11a   :  { %862 = vmatprep.mubr.bf16.mxu0 %v168_v32  ;;  %867 = vmatpush3.bf16.msra.mxu1 %v963_v15  ;;  %v977_v32 = vld [vmem:[#allocation5 + $0x30] sm:$0xff]  }
 0x11b   :  { %863 = vmatmul.mubr.bf16.vlgmr.msra.gmra.mrb[4].mxu0 %v169_v33  ;;  %868 = vmatprep.subr.bf16.mxu1 %v964_v34  ;;  %v978_v33 = vld [vmem:[#allocation5 + $0x38] sm:$0xff]  }
 0x11c   :  { %887 = vmatpush3.bf16.msra.mxu0 %v1202_v7 }
 0x11d   :  { %888 = vmatprep.subr.bf16.mxu0 %v1204_v8 }
 0x11e   :  { %869 = vmatpush3.bf16.msra.mxu1 %v964_v34 }
 0x11f   :  { %870 = vmatprep.subr.bf16.mxu1 %v965_v35 }
 0x120   :  { %889 = vmatpush3.bf16.msra.mxu0 %v1204_v8 }
 0x121   :  { %890 = vmatprep.subr.bf16.mxu0 %v1211_v9 }
 0x122   :  { %871 = vmatpush3.bf16.msra.mxu1 %v965_v35 }
 0x123   :  { %872 = vmatprep.subr.bf16.mxu1 %v966_v36 }
 0x124   :  { %891 = vmatpush3.bf16.msra.mxu0 %v1211_v9 }
 0x125   :  { %892 = vmatprep.subr.bf16.mxu0 %v1214_v10 }
 0x126   :  { %873 = vmatpush3.bf16.msra.mxu1 %v966_v36 }
 0x127   :  { %874 = vmatprep.subr.bf16.mxu1 %v967_v37 }
 0x128   :  { %893 = vmatpush3.bf16.msra.mxu0 %v1214_v10 }
 0x129   :  { %894 = vmatprep.subr.bf16.mxu0 %v1220_v11 }
 0x12a   :  { %875 = vmatpush3.bf16.msra.mxu1 %v967_v37 }
 0x12b   :  { %876 = vmatprep.subr.bf16.mxu1 %v968_v38 }
 0x12c   :  { %895 = vmatpush3.bf16.msra.mxu0 %v1220_v11 }
 0x12d   :  { %896 = vmatprep.subr.bf16.mxu0 %v1226_v12 }
 0x12e   :  { %877 = vmatpush3.bf16.msra.mxu1 %v968_v38 }
 0x12f   :  { %878 = vmatprep.subr.bf16.mxu1 %v969_v39 }
 0x130   :  { %897 = vmatpush3.bf16.msra.mxu0 %v1226_v12 }
 0x131   :  { %898 = vmatprep.subr.bf16.mxu0 %v1238_v13 }
 0x132   :  { %879 = vmatpush3.bf16.msra.mxu1 %v969_v39 }
 0x133   :  { %880 = vmatprep.subr.bf16.mxu1 %v970_v40 }
 0x134   :  { %899 = vmatpush3.bf16.msra.mxu0 %v1238_v13 }
 0x135   :  { %900 = vmatprep.subr.bf16.mxu0 %v1244_v14 }
 0x136   :  { %881 = vmatpush3.bf16.msra.mxu1 %v970_v40 }
 0x137   :  { %906 = vmatprep.subr.bf16.mxu1 %v1202_v7 }
 0x138   :  { %901 = vmatpush3.bf16.msra.mxu0 %v1244_v14 }
 0x1ec   :  { %v844_v41 = vpop.f32.mrb[0].mxu1 }
 0x1ed   :  { %v316_v42 = vmul.f32 %v844_v41, %v844_v41  ;;  %v252_v43 = vpop.f32.mrb[1].mxu1  ;;  %v325_v61 = vsub.f32 %v1254_v22, %v844_v41 }
 0x1ee   :  { %v314_v44 = vmul.f32 %v252_v43, %v252_v43  ;;  %v845_v45 = vpop.f32.mrb[2].mxu1  ;;  %v864_v46 = vpop.f32.mrb[4].mxu0  ;;  %v323_v63 = vsub.f32 %v1256_v24, %v252_v43 }
 0x1ef   :  { %v319_v47 = vsub.f32 %v864_v46, %v316_v42  ;;  %v255_v48 = vpop.f32.mrb[3].mxu1  ;;  %v300_v49 = vpop.f32.mrb[5].mxu0 }
 0x1f0   :  { %v315_v50 = vmul.f32 %v255_v48, %v255_v48  ;;  %v317_v51 = vsub.f32 %v300_v49, %v314_v44  ;;  %v865_v52 = vpop.f32.mrb[6].mxu0  ;;  %v324_v2 = vsub.f32 %v1258_v26, %v255_v48 }
 0x1f1   :  { %v322_v53 = vmax.f32 %v319_v47, 0.0  ;;  %v303_v54 = vpop.f32.mrb[7].mxu0 }
 0x1f2   :  { %v320_v55 = vmax.f32 %v317_v51, 0.0  ;;  %v318_v56 = vsub.f32 %v303_v54, %v315_v50 }
 0x1f3   :  { %v328_v57 = vadd.f32 1e-05, %v322_v53 }
 0x1f4   :  { %v326_v58 = vadd.f32 1e-05, %v320_v55  ;;  %v321_v59 = vmax.f32 %v318_v56, 0.0 }
 0x1f5   :  { %979 = vrsqrt.f32 %v328_v57 }
 0x1f6   :  { %981 = vrsqrt.f32 %v326_v58  ;;  %v327_v60 = vadd.f32 1e-05, %v321_v59 }
 0x1f8   :  { %983 = vrsqrt.f32 %v327_v60 }
 0x1ff   :  { %v980_v62 = vpop.eup %979 }
 0x200   :  { %v982_v0 = vpop.eup %981  ;;  %v334_v1 = vmul.f32 %v980_v62, %v325_v61 }
 0x201   :  { %v332_v3 = vmul.f32 %v982_v0, %v323_v63 }
 0x202   :  { %v984_v4 = vpop.eup %983  ;;  %v353_v15 = vpack.c.bf16 %v334_v1, %v334_v1  ;;  %v748_v1 = vld [vmem:[%s1347_s6] ss:$0 sm:$0xff] }
 0x203   :  { %v333_v5 = vmul.f32 %v984_v4, %v324_v2 }
 0x205   :  { %v352_v6 = vpack.c.bf16 %v333_v5, %v332_v3 }
 0x207   :  { %882 = vmatprep.mubr.bf16.mxu1 %v352_v6 }
 0x208   :  { %883 = vmatmul.mubr.bf16.vlgmr.msra.gmra.mrb[4].mxu1 %v353_v15 }
 0x209   :  { %907 = vmatpush3.bf16.msra.mxu1 %v1202_v7  ;;  %v971_v7 = vld [vmem:[#allocation5] sm:$0xff]  }
 0x20a   :  { %908 = vmatprep.subr.bf16.mxu1 %v1204_v8  ;;  %926 = vmatprep.subr.bf16.mxu0 %v971_v7 }
 0x20d   :  { %909 = vmatpush3.bf16.msra.mxu1 %v1204_v8  ;;  %v739_v8 = vld [vmem:[%s1345_s4] ss:$0 sm:$0xff] }
 0x20e   :  { %910 = vmatprep.subr.bf16.mxu1 %v1211_v9 }
 0x211   :  { %911 = vmatpush3.bf16.msra.mxu1 %v1211_v9 }
 0x212   :  { %912 = vmatprep.subr.bf16.mxu1 %v1214_v10 }
 0x215   :  { %913 = vmatpush3.bf16.msra.mxu1 %v1214_v10 }
 0x216   :  { %914 = vmatprep.subr.bf16.mxu1 %v1220_v11 }
 0x219   :  { %915 = vmatpush3.bf16.msra.mxu1 %v1220_v11 }
 0x21a   :  { %916 = vmatprep.subr.bf16.mxu1 %v1226_v12 }
 0x21d   :  { %917 = vmatpush3.bf16.msra.mxu1 %v1226_v12 }
 0x21e   :  { %918 = vmatprep.subr.bf16.mxu1 %v1238_v13 }
 0x221   :  { %919 = vmatpush3.bf16.msra.mxu1 %v1238_v13 }
 0x222   :  { %920 = vmatprep.subr.bf16.mxu1 %v1244_v14 }
 0x225   :  { %921 = vmatpush3.bf16.msra.mxu1 %v1244_v14 }
 0x2db   :  { %v884_v9 = vpop.f32.mrb[4].mxu1 }
 0x2dc   :  { %v451_v10 = vadd.f32 %v884_v9, %v739_v8  ;;  %v442_v11 = vpop.f32.mrb[5].mxu1 }
 0x2dd   :  { %v443_v16 = vadd.f32 %v739_v8, %v442_v11  ;;  %v885_v17 = vpop.f32.mrb[6].mxu1 }
 0x2de   :  { %v1307_v12 = vmax.f32 %v451_v10, 0.0  ;;  %v445_v18 = vpop.f32.mrb[7].mxu1 }
 0x2df   :  { %v1309_v19 = vmax.f32 %v443_v16, 0.0  ;;  %v446_v13 = vadd.f32 %v739_v8, %v445_v18 }
 0x2e0   :  { %v463_v14 = vmul.f32 %v1307_v12, %v1307_v12  ;;  %v460_v24 = vpack.c.bf16 %v1307_v12, %v1307_v12 }
 0x2e1   :  { %v1311_v20 = vmax.f32 %v446_v13, 0.0  ;;  %v461_v21 = vmul.f32 %v1309_v19, %v1309_v19 }
 0x2e2   :  { %v465_v26 = vpack.c.bf16 %v463_v14, %v463_v14 }
 0x2e3   :  { %v462_v22 = vmul.f32 %v1311_v20, %v1311_v20  ;;  %v459_v23 = vpack.c.bf16 %v1311_v20, %v1309_v19 }
 0x2e5   :  { %902 = vmatprep.mubr.bf16.mxu0 %v459_v23  ;;  %v464_v25 = vpack.c.bf16 %v462_v22, %v461_v21 }
 0x2e6   :  { %903 = vmatmul.mubr.bf16.vlgmr.msra.gmra.mrb[8].mxu0 %v460_v24 }
 0x2e7   :  { %922 = vmatprep.mubr.bf16.mxu1 %v464_v25  ;;  %927 = vmatpush3.bf16.msra.mxu0 %v971_v7 }
 0x2e8   :  { %923 = vmatmul.mubr.bf16.vlgmr.msra.gmra.mrb[8].mxu1 %v465_v26  ;;  %928 = vmatprep.subr.bf16.mxu0 %v972_v27 }
 0x2eb   :  { %929 = vmatpush3.bf16.msra.mxu0 %v972_v27 }
 0x2ec   :  { %930 = vmatprep.subr.bf16.mxu0 %v973_v28 }
 0x2ef   :  { %931 = vmatpush3.bf16.msra.mxu0 %v973_v28 }
 0x2f0   :  { %932 = vmatprep.subr.bf16.mxu0 %v974_v29 }
 0x2f3   :  { %933 = vmatpush3.bf16.msra.mxu0 %v974_v29 }
 0x2f4   :  { %934 = vmatprep.subr.bf16.mxu0 %v975_v30 }
 0x2f7   :  { %935 = vmatpush3.bf16.msra.mxu0 %v975_v30 }
 0x2f8   :  { %936 = vmatprep.subr.bf16.mxu0 %v976_v31 }
 0x2fb   :  { %937 = vmatpush3.bf16.msra.mxu0 %v976_v31 }
 0x2fc   :  { %938 = vmatprep.subr.bf16.mxu0 %v977_v32 }
 0x2ff   :  { %939 = vmatpush3.bf16.msra.mxu0 %v977_v32 }
 0x300   :  { %940 = vmatprep.subr.bf16.mxu0 %v978_v33 }
 0x303   :  { %941 = vmatpush3.bf16.msra.mxu0 %v978_v33 }
 0x3b9   :  { %v904_v34 = vpop.f32.mrb[8].mxu0 }
 0x3ba   :  { %v564_v35 = vmul.f32 %v904_v34, %v904_v34  ;;  %v500_v36 = vpop.f32.mrb[9].mxu0  ;;  %v573_v54 = vsub.f32 %v1307_v12, %v904_v34 }
 0x3bb   :  { %v562_v37 = vmul.f32 %v500_v36, %v500_v36  ;;  %v905_v38 = vpop.f32.mrb[10].mxu0  ;;  %v924_v39 = vpop.f32.mrb[8].mxu1  ;;  %v571_v56 = vsub.f32 %v1309_v19, %v500_v36 }
 0x3bc   :  { %v567_v40 = vsub.f32 %v924_v39, %v564_v35  ;;  %v503_v41 = vpop.f32.mrb[11].mxu0  ;;  %v548_v42 = vpop.f32.mrb[9].mxu1 }
 0x3bd   :  { %v563_v43 = vmul.f32 %v503_v41, %v503_v41  ;;  %v565_v44 = vsub.f32 %v548_v42, %v562_v37  ;;  %v925_v45 = vpop.f32.mrb[10].mxu1  ;;  %v572_v59 = vsub.f32 %v1311_v20, %v503_v41 }
 0x3be   :  { %v570_v46 = vmax.f32 %v567_v40, 0.0  ;;  %v551_v47 = vpop.f32.mrb[11].mxu1 }
 0x3bf   :  { %v568_v48 = vmax.f32 %v565_v44, 0.0  ;;  %v566_v49 = vsub.f32 %v551_v47, %v563_v43 }
 0x3c0   :  { %v576_v50 = vadd.f32 1e-05, %v570_v46 }
 0x3c1   :  { %v574_v51 = vadd.f32 1e-05, %v568_v48  ;;  %v569_v52 = vmax.f32 %v566_v49, 0.0 }
 0x3c2   :  { %985 = vrsqrt.f32 %v576_v50 }
 0x3c3   :  { %987 = vrsqrt.f32 %v574_v51  ;;  %v575_v53 = vadd.f32 1e-05, %v569_v52 }
 0x3c5   :  { %989 = vrsqrt.f32 %v575_v53 }
 0x3cc   :  { %v986_v55 = vpop.eup %985 }
 0x3cd   :  { %v988_v57 = vpop.eup %987  ;;  %v582_v58 = vmul.f32 %v986_v55, %v573_v54 }
 0x3ce   :  { %v580_v60 = vmul.f32 %v988_v57, %v571_v56 }
 0x3cf   :  { %v990_v61 = vpop.eup %989  ;;  %v601_v0 = vpack.c.bf16 %v582_v58, %v582_v58 }
 0x3d0   :  { %v581_v62 = vmul.f32 %v990_v61, %v572_v59 }
 0x3d2   :  { %v600_v63 = vpack.c.bf16 %v581_v62, %v580_v60 }
 0x3d4   :  { %942 = vmatprep.mubr.bf16.mxu0 %v600_v63 }
 0x3d5   :  { %943 = vmatmul.mubr.bf16.vlgmr.msra.gmra.mrb[12].mxu0 %v601_v0 }
 0x4a8   :  { %v944_v2 = vpop.f32.mrb[12].mxu0 }
 0x4a9   :  { %v699_v3 = vadd.f32 %v944_v2, %v748_v1  ;;  %v690_v4 = vpop.f32.mrb[13].mxu0 }
 0x4aa   :  { %v691_v5 = vadd.f32 %v748_v1, %v690_v4  ;;  %v945_v6 = vpop.f32.mrb[14].mxu0 }
 0x4ab   :  { %v706_v15 = vmax.f32 %v699_v3, 0.0  ;;  %v693_v7 = vpop.f32.mrb[15].mxu0 }
 0x4ac   :  { %v704_v8 = vmax.f32 %v691_v5, 0.0  ;;  %v694_v9 = vadd.f32 %v748_v1, %v693_v7 }
 0x4ad   :  { %709 = vst [vmem:[#allocation8 + $0x10] sm:$0xff] %v706_v15 }
 0x4ae   :  { %707 = vst [vmem:[#allocation8] sm:$0xff] %v704_v8  ;;  %v705_v10 = vmax.f32 %v694_v9, 0.0 }
 0x4b0   :  { %708 = vst [vmem:[#allocation8 + $0x8] sm:$0xff] %v705_v10 }
 0x4b1   :  { %1068 = shalt.err (!%p1065_p0)
}
 0x4b2   :  { %s1069_s10 = scalar_lea.hbm %s1349_s8, 384 }
 0x4b3   :  { %p1070_p1 = scmp.ne.s32.totalorder %s1349_s8, %s1069_s10  ;;  %p1073_p2 = scmp.lt.u32.totalorder %s1069_s10, %s1349_s8 }
 0x4b5   :  { %p1075_p3 = pnand %p1073_p2, %p1070_p1 }
 0x4b7   :  { %1078 = shalt.err (!%p1075_p3)
}
 0x4b8   :  { %s1091_s15 = smov 128   ;;  %s1092_s16 = smov 8  }
 0x4b9   :  { %721 = dma.vmem_to_hbm [thread:$0]  %s716_s5, 384, %s1349_s8, [#allocation4], %s1091_s15, %s1091_s15, %s1092_s16  }
 0x4ba   :  { %1083 = dma.done.wait [#allocation4], 384  }
 0x4bb   :  { %1084 = vsyncadd [#allocation4], 4294966912 }
 0x4bc   :  { %725 = vsyncpa [#allocation3], 1 }
 0x4bd   :  { %726 = vsyncpa [#allocation6], 1 }
 0x4be   :  { %727 = vsyncpa [#allocation4], 1 }

</bundles_post_ra>
